<compile_context>
chip_gen: v5e
topology: v5e:2x2
jax: 0.10.0
libtpu: 0.0.40
codegen_flags: <defaults>
</compile_context>

<pallas_src>
import functools
import math

import jax
import jax.numpy as jnp
from jax.experimental import pallas as pl
from jax.experimental.pallas import tpu as pltpu


# Keep the resident-y slab small enough that its (double-buffered) VMEM cost
# plus all other buffers fits comfortably under v7x's 64 MiB physical VMEM.
_RESIDENT_Y_BYTES = 8 << 20  # 8 MiB (x2 for buffering -> 16 MiB)


def _gcn_layer_kernel(adj_ref, y_ref, b_ref, m_ref, x_out_ref, m_out_ref,
                      acc_ref, *, tk, y_resident):
    """adj @ y accumulation + (bias, relu, running JK max) epilogue.

    Grid = (Np/TM, Np/TK); axis 0 = output row tile (parallel),
    axis 1 = adjacency reduction (arbitrary, innermost).

    adj_ref:   (TM, TK)          adjacency tile (compute dtype)
    y_ref:     (Np, H) or (TK,H) y = x @ W, resident slab or streamed tile
    b_ref:     (1, H)            layer bias, f32
    m_ref:     (TM, H)           running JK max (input), f32
    x_out_ref: (TM, H)           relu(adj @ y + b)  (compute dtype)
    m_out_ref: (TM, H)           max(m, x_out), f32 (aliased onto m's buffer)
    acc_ref:   (TM, H)           f32 scratch accumulator
    """
    k = pl.program_id(1)

    @pl.when(k == 0)
    def _init():
        acc_ref[...] = jnp.zeros_like(acc_ref)

    if y_resident:
        start = pl.multiple_of(k * tk, tk)
        y_tile = y_ref[pl.ds(start, tk), :]
    else:
        y_tile = y_ref[...]

    # acc += adj_tile @ y_tile   (MXU, f32 accumulation)
    acc_ref[...] += jnp.dot(adj_ref[...], y_tile,
                            preferred_element_type=jnp.float32)

    @pl.when(k == pl.num_programs(1) - 1)
    def _epilogue():
        h = acc_ref[...] + b_ref[...]          # bias, f32
        h = jnp.maximum(h, 0.0)                # relu
        x_out_ref[...] = h.astype(x_out_ref.dtype)
        m_out_ref[...] = jnp.maximum(m_ref[...], h)   # JK running max


def _choose_tiles(n_pad):
    """Pick (tm, tk): big enough for HBM efficiency, small enough not to
    over-pad tiny graphs, and keeping >= 2 row tiles for v7x's 2 TCs."""
    tm = None
    for cand in (512, 384, 256, 128):
        if n_pad % cand == 0 and n_pad // cand >= 2:
            tm = cand
            break
    if tm is None:
        half = n_pad // 2
        tm = half if (half >= 8 and half % 8 == 0) else n_pad
    tk = 128
    for cand in (512, 384, 256, 128):
        if n_pad % cand == 0:
            tk = cand
            break
    return tm, tk


def _vmem_limit_bytes(n_pad, h_dim, tm, tk, c_itemsize, y_resident):
    y_rows = n_pad if y_resident else tk
    buffers = (2 * tm * tk * c_itemsize          # adj tiles (double-buffered)
               + 2 * y_rows * h_dim * c_itemsize  # y (resident slab or tile)
               + 2 * h_dim * 4                    # bias
               + 2 * tm * h_dim * 4               # m in
               + 2 * tm * h_dim * c_itemsize      # x_out
               + 2 * tm * h_dim * 4               # m_out
               + tm * h_dim * 4)                  # acc scratch
    limit = int(buffers * 1.25) + (4 << 20)
    return max(32 << 20, min(limit, 64 << 20))    # cap at v7x physical VMEM


def _gcn_layer(adj, y, b, m, *, tm, tk, y_resident):
    """One layer: returns (x_new[compute dtype], m_new[f32]); shapes (Np, H)."""
    n_pad, h_dim = y.shape
    grid = (n_pad // tm, n_pad // tk)
    c_itemsize = jnp.dtype(adj.dtype).itemsize

    if y_resident:
        y_spec = pl.BlockSpec((n_pad, h_dim), lambda i, k: (0, 0))
        y_reads = 1
    else:
        y_spec = pl.BlockSpec((tk, h_dim), lambda i, k: (k, 0))
        y_reads = n_pad // tm

    flops = 2 * n_pad * n_pad * h_dim
    bytes_accessed = (adj.size * c_itemsize
                      + y_reads * y.size * c_itemsize
                      + b.size * 4
                      + 2 * m.size * 4                       # m in + m out
                      + n_pad * h_dim * c_itemsize)          # x_out

    kernel = functools.partial(_gcn_layer_kernel, tk=tk, y_resident=y_resident)

    return pl.pallas_call(
        kernel,
        out_shape=(jax.ShapeDtypeStruct((n_pad, h_dim), adj.dtype),     # x_new
                   jax.ShapeDtypeStruct((n_pad, h_dim), jnp.float32)),  # m_new
        grid_spec=pltpu.PrefetchScalarGridSpec(
            num_scalar_prefetch=0,
            grid=grid,
            in_specs=[
                pl.BlockSpec((tm, tk), lambda i, k: (i, k)),      # adj tile
                y_spec,                                           # y (resident or tile)
                pl.BlockSpec((1, h_dim), lambda i, k: (0, 0)),    # bias
                pl.BlockSpec((tm, h_dim), lambda i, k: (i, 0)),   # running max in
            ],
            out_specs=(
                pl.BlockSpec((tm, h_dim), lambda i, k: (i, 0)),   # x_new
                pl.BlockSpec((tm, h_dim), lambda i, k: (i, 0)),   # m_new
            ),
            scratch_shapes=[pltpu.VMEM((tm, h_dim), jnp.float32)],
        ),
        compiler_params=pltpu.CompilerParams(
            dimension_semantics=("parallel", "arbitrary"),
            vmem_limit_bytes=_vmem_limit_bytes(n_pad, h_dim, tm, tk,
                                               c_itemsize, y_resident)),
        cost_estimate=pl.CostEstimate(flops=flops, transcendentals=0,
                                      bytes_accessed=bytes_accessed),
        input_output_aliases={3: 1},   # m (input) updated in place as m_new
    )(adj, y, b, m)


@functools.partial(jax.jit, static_argnames=("compute_dtype",))
def jknet_block_forward(x, adj, weights, biases, *, compute_dtype=jnp.bfloat16):
    """JKNetBlock forward.

    x:       (N, H) f32 node features (in_channels == out_channels == H)
    adj:     (N, N) f32 dense adjacency
    weights: (L, H, H) f32 per-layer GCN weights
    biases:  (L, H)    f32 per-layer biases
    Returns (N, H) f32: elementwise max over [x, layer_1, ..., layer_L].
    """
    n, h_dim = x.shape
    nlayers = weights.shape[0]

    # Pad node count to a multiple of 128 only (lane alignment); tiles are then
    # chosen as divisors of n_pad so small graphs are not over-padded.
    n_pad = ((n + 127) // 128) * 128
    pad = n_pad - n
    tm, tk = _choose_tiles(n_pad)

    x_f32 = x.astype(jnp.float32)
    adj_c = adj.astype(compute_dtype)
    if pad:
        x_f32 = jnp.pad(x_f32, ((0, pad), (0, 0)))
        adj_c = jnp.pad(adj_c, ((0, pad), (0, pad)))

    c_itemsize = jnp.dtype(compute_dtype).itemsize
    y_resident = n_pad * h_dim * c_itemsize <= _RESIDENT_Y_BYTES

    m = x_f32                                  # jknetout[0] = x, kept in f32
    x_c = x_f32.astype(compute_dtype)

    for l in range(nlayers):
        # Hoisted weight GEMM (torch order: adj @ (x @ W)); negligible vs adj@y.
        y = jnp.dot(x_c, weights[l].astype(compute_dtype),
                    preferred_element_type=jnp.float32).astype(compute_dtype)
        b_l = biases[l].reshape(1, h_dim).astype(jnp.float32)
        x_c, m = _gcn_layer(adj_c, y, b_l, m, tm=tm, tk=tk,
                            y_resident=y_resident)
        # TODO(synk): training-mode dropout is stochastic; identity here (eval).

    return m[:n].astype(x.dtype)


def init_params(key, nlayers, hidden):
    """Mirrors GraphConvolutionBS.reset_parameters: U(-stdv, stdv), stdv=1/sqrt(out)."""
    stdv = 1.0 / math.sqrt(hidden)
    kw, kb = jax.random.split(key)
    weights = jax.random.uniform(
        kw, (nlayers, hidden, hidden), jnp.float32, minval=-stdv, maxval=stdv)
    biases = jax.random.uniform(
        kb, (nlayers, hidden), jnp.float32, minval=-stdv, maxval=stdv)
    return weights, biases


def jknet_reference(x, adj, weights, biases):
    """Pure-JAX f32 reference."""
    jk = [x]
    h = x
    for l in range(weights.shape[0]):
        h = jnp.maximum(adj @ (h @ weights[l]) + biases[l][None, :], 0.0)
        jk.append(h)
    return jnp.max(jnp.stack(jk, axis=0), axis=0)


if __name__ == "__main__":
    # Small, module-consistent shapes: N nodes (not tile-aligned, exercising the
    # padding path), in_channels == out_channels == H.
    N, H, NLAYERS = 200, 128, 3

    key = jax.random.PRNGKey(0)
    kx, kadj, kp = jax.random.split(key, 3)

    x = jax.random.normal(kx, (N, H), jnp.float32)

    # Deterministic symmetric, row-normalized dense adjacency with self loops.
    a = (jax.random.uniform(kadj, (N, N)) > 0.8).astype(jnp.float32)
    a = jnp.maximum(a, a.T) + jnp.eye(N, dtype=jnp.float32)
    adj = a / jnp.sum(a, axis=1, keepdims=True)

    weights, biases = init_params(kp, NLAYERS, H)

    ref = jknet_reference(x, adj, weights, biases)

    # f32 compute path: must match the reference tightly.
    out_f32 = jknet_block_forward(x, adj, weights, biases,
                                  compute_dtype=jnp.float32)
    out_f32 = jax.block_until_ready(out_f32)
    assert out_f32.shape == (N, H)
    assert jnp.allclose(out_f32, ref, atol=1e-4, rtol=1e-4), "f32 mismatch vs reference"

    # bf16 compute path (f32 accumulation): looser tolerance for input quantization.
    out_bf16 = jknet_block_forward(x, adj, weights, biases,
                                   compute_dtype=jnp.bfloat16)
    out_bf16 = jax.block_until_ready(out_bf16)
    assert out_bf16.shape == (N, H)
    assert jnp.allclose(out_bf16, ref, atol=3e-2, rtol=3e-2), "bf16 mismatch vs reference"

    print("KERNEL_OK")
</pallas_src>

<mosaic_0001>
module attributes {stable_mosaic.version = 11 : i64} {
  func.func @_gcn_layer_kernel(%arg0: i32, %arg1: i32, %arg2: memref<128x256xf32, #tpu.memory_space<vmem>>, %arg3: memref<256x128xf32, #tpu.memory_space<vmem>>, %arg4: memref<1x128xf32, #tpu.memory_space<vmem>>, %arg5: memref<128x128xf32, #tpu.memory_space<vmem>>, %arg6: memref<128x128xf32, #tpu.memory_space<vmem>>, %arg7: memref<128x128xf32, #tpu.memory_space<vmem>>, %arg8: memref<128x128xf32, #tpu.memory_space<vmem>>) attributes {dimension_semantics = [#tpu.dimension_semantics<parallel>, #tpu.dimension_semantics<arbitrary>], iteration_bounds = array<i64: 2, 1>, scalar_prefetch = 0 : i64, scratch_operands = 1 : i64, tpu.core_type = #tpu.core_type<tc>, window_params = [{transform_indices = @transform_0, window_bounds = array<i64: 128, 256>}, {pipeline_mode = #tpu.pipeline_mode<synchronous>, transform_indices = @transform_1, window_bounds = array<i64: 256, 128>}, {pipeline_mode = #tpu.pipeline_mode<synchronous>, transform_indices = @transform_2, window_bounds = array<i64: 1, 128>}, {transform_indices = @transform_3, window_bounds = array<i64: 128, 128>}, {transform_indices = @transform_4, window_bounds = array<i64: 128, 128>}, {transform_indices = @transform_5, window_bounds = array<i64: 128, 128>}]} {
    %c0_i32 = arith.constant 0 : i32
    %0 = arith.cmpi eq, %arg1, %c0_i32 : i32
    %1 = arith.extui %0 : i1 to i32
    %c0_i32_0 = arith.constant 0 : i32
    %2 = arith.cmpi ne, %1, %c0_i32_0 : i32
    scf.if %2 {
      %cst_9 = arith.constant 0.000000e+00 : f32
      %15 = vector.broadcast %cst_9 : f32 to vector<128x128xf32>
      %c0_10 = arith.constant 0 : index
      %c0_11 = arith.constant 0 : index
      %16 = vector.load %arg8[%c0_10, %c0_11] : memref<128x128xf32, #tpu.memory_space<vmem>>, vector<128x128xf32>
      tpu.vector_store %arg8[%c0_10, %c0_11], %15 {strides = array<i32>} : memref<128x128xf32, #tpu.memory_space<vmem>>, vector<128x128xf32>,
    } else {
    }
    %c256_i32 = arith.constant 256 : i32
    %3 = arith.muli %arg1, %c256_i32 : i32
    %4 = tpu.assume_multiple %3, 256 : i32
    %5 = arith.index_cast %4 : i32 to index
    %c0 = arith.constant 0 : index
    %6 = vector.load %arg3[%5, %c0] : memref<256x128xf32, #tpu.memory_space<vmem>>, vector<256x128xf32>
    %c0_1 = arith.constant 0 : index
    %c0_2 = arith.constant 0 : index
    %7 = vector.load %arg8[%c0_1, %c0_2] : memref<128x128xf32, #tpu.memory_space<vmem>>, vector<128x128xf32>
    %c0_3 = arith.constant 0 : index
    %c0_4 = arith.constant 0 : index
    %8 = vector.load %arg2[%c0_3, %c0_4] : memref<128x256xf32, #tpu.memory_space<vmem>>, vector<128x256xf32>
    %cst = arith.constant dense<0.000000e+00> : vector<128x128xf32>
    %9 = tpu.matmul %8, %6, %cst {dimension_numbers = #tpu.dot_dimension_numbers<[1], [0], [0], [1], [0, 0, 1, 1], [], []>} : vector<128x256xf32>, vector<256x128xf32>, vector<128x128xf32> -> vector<128x128xf32>
    %10 = arith.addf %7, %9 : vector<128x128xf32>
    %c0_5 = arith.constant 0 : index
    %c0_6 = arith.constant 0 : index
    %11 = vector.load %arg8[%c0_5, %c0_6] : memref<128x128xf32, #tpu.memory_space<vmem>>, vector<128x128xf32>
    tpu.vector_store %arg8[%c0_5, %c0_6], %10 {strides = array<i32>} : memref<128x128xf32, #tpu.memory_space<vmem>>, vector<128x128xf32>,
    %c0_i32_7 = arith.constant 0 : i32
    %12 = arith.cmpi eq, %arg1, %c0_i32_7 : i32
    %13 = arith.extui %12 : i1 to i32
    %c0_i32_8 = arith.constant 0 : i32
    %14 = arith.cmpi ne, %13, %c0_i32_8 : i32
    scf.if %14 {
      %c0_9 = arith.constant 0 : index
      %c0_10 = arith.constant 0 : index
      %15 = vector.load %arg8[%c0_9, %c0_10] : memref<128x128xf32, #tpu.memory_space<vmem>>, vector<128x128xf32>
      %c0_11 = arith.constant 0 : index
      %c0_12 = arith.constant 0 : index
      %16 = vector.load %arg4[%c0_11, %c0_12] : memref<1x128xf32, #tpu.memory_space<vmem>>, vector<1x128xf32>
      %17 = vector.broadcast %16 : vector<1x128xf32> to vector<128x128xf32>
      %18 = arith.addf %15, %17 : vector<128x128xf32>
      %cst_13 = arith.constant 0.000000e+00 : f32
      %19 = vector.broadcast %cst_13 : f32 to vector<128x128xf32>
      %20 = arith.maximumf %18, %19 : vector<128x128xf32>
      %c0_14 = arith.constant 0 : index
      %c0_15 = arith.constant 0 : index
      %21 = vector.load %arg6[%c0_14, %c0_15] : memref<128x128xf32, #tpu.memory_space<vmem>>, vector<128x128xf32>
      tpu.vector_store %arg6[%c0_14, %c0_15], %20 {strides = array<i32>} : memref<128x128xf32, #tpu.memory_space<vmem>>, vector<128x128xf32>,
      %c0_16 = arith.constant 0 : index
      %c0_17 = arith.constant 0 : index
      %22 = vector.load %arg5[%c0_16, %c0_17] : memref<128x128xf32, #tpu.memory_space<vmem>>, vector<128x128xf32>
      %23 = arith.maximumf %22, %20 : vector<128x128xf32>
      %c0_18 = arith.constant 0 : index
      %c0_19 = arith.constant 0 : index
      %24 = vector.load %arg7[%c0_18, %c0_19] : memref<128x128xf32, #tpu.memory_space<vmem>>, vector<128x128xf32>
      tpu.vector_store %arg7[%c0_18, %c0_19], %23 {strides = array<i32>} : memref<128x128xf32, #tpu.memory_space<vmem>>, vector<128x128xf32>,
    } else {
    }
    return
  }
  func.func @transform_0(%arg0: i32, %arg1: i32) -> (i32, i32) {
    %c0_i32 = arith.constant 0 : i32
    return %arg0, %arg1 : i32, i32
  }
  func.func @transform_1(%arg0: i32, %arg1: i32) -> (i32, i32) {
    %c0_i32 = arith.constant 0 : i32
    %c0_i32_0 = arith.constant 0 : i32
    %c0_i32_1 = arith.constant 0 : i32
    return %c0_i32, %c0_i32_0 : i32, i32
  }
  func.func @transform_2(%arg0: i32, %arg1: i32) -> (i32, i32) {
    %c0_i32 = arith.constant 0 : i32
    %c0_i32_0 = arith.constant 0 : i32
    %c0_i32_1 = arith.constant 0 : i32
    return %c0_i32, %c0_i32_0 : i32, i32
  }
  func.func @transform_3(%arg0: i32, %arg1: i32) -> (i32, i32) {
    %c0_i32 = arith.constant 0 : i32
    %c0_i32_0 = arith.constant 0 : i32
    return %arg0, %c0_i32 : i32, i32
  }
  func.func @transform_4(%arg0: i32, %arg1: i32) -> (i32, i32) {
    %c0_i32 = arith.constant 0 : i32
    %c0_i32_0 = arith.constant 0 : i32
    return %arg0, %c0_i32 : i32, i32
  }
  func.func @transform_5(%arg0: i32, %arg1: i32) -> (i32, i32) {
    %c0_i32 = arith.constant 0 : i32
    %c0_i32_0 = arith.constant 0 : i32
    return %arg0, %c0_i32 : i32, i32
  }
}

module attributes {stable_mosaic.version = 11 : i64} {
  func.func @_gcn_layer_kernel(%arg0: i32, %arg1: i32, %arg2: memref<128x256xf32, #tpu.memory_space<vmem>>, %arg3: memref<256x128xf32, #tpu.memory_space<vmem>>, %arg4: memref<1x128xf32, #tpu.memory_space<vmem>>, %arg5: memref<128x128xf32, #tpu.memory_space<vmem>>, %arg6: memref<128x128xf32, #tpu.memory_space<vmem>>, %arg7: memref<128x128xf32, #tpu.memory_space<vmem>>, %arg8: memref<128x128xf32, #tpu.memory_space<vmem>>) attributes {dimension_semantics = [#tpu.dimension_semantics<parallel>, #tpu.dimension_semantics<arbitrary>], iteration_bounds = array<i64: 2, 1>, scalar_prefetch = 0 : i64, scratch_operands = 1 : i64, tpu.core_type = #tpu.core_type<tc>, window_params = [{transform_indices = @transform_0, window_bounds = array<i64: 128, 256>}, {pipeline_mode = #tpu.pipeline_mode<synchronous>, transform_indices = @transform_1, window_bounds = array<i64: 256, 128>}, {pipeline_mode = #tpu.pipeline_mode<synchronous>, transform_indices = @transform_2, window_bounds = array<i64: 1, 128>}, {transform_indices = @transform_3, window_bounds = array<i64: 128, 128>}, {transform_indices = @transform_4, window_bounds = array<i64: 128, 128>}, {transform_indices = @transform_5, window_bounds = array<i64: 128, 128>}]} {
    %c0_i32 = arith.constant 0 : i32
    %0 = arith.cmpi eq, %arg1, %c0_i32 : i32
    %1 = arith.extui %0 : i1 to i32
    %c0_i32_0 = arith.constant 0 : i32
    %2 = arith.cmpi ne, %1, %c0_i32_0 : i32
    scf.if %2 {
      %cst_9 = arith.constant 0.000000e+00 : f32
      %15 = vector.broadcast %cst_9 : f32 to vector<128x128xf32>
      %c0_10 = arith.constant 0 : index
      %c0_11 = arith.constant 0 : index
      %16 = vector.load %arg8[%c0_10, %c0_11] : memref<128x128xf32, #tpu.memory_space<vmem>>, vector<128x128xf32>
      tpu.vector_store %arg8[%c0_10, %c0_11], %15 {strides = array<i32>} : memref<128x128xf32, #tpu.memory_space<vmem>>, vector<128x128xf32>,
    } else {
    }
    %c256_i32 = arith.constant 256 : i32
    %3 = arith.muli %arg1, %c256_i32 : i32
    %4 = tpu.assume_multiple %3, 256 : i32
    %5 = arith.index_cast %4 : i32 to index
    %c0 = arith.constant 0 : index
    %6 = vector.load %arg3[%5, %c0] : memref<256x128xf32, #tpu.memory_space<vmem>>, vector<256x128xf32>
    %c0_1 = arith.constant 0 : index
    %c0_2 = arith.constant 0 : index
    %7 = vector.load %arg8[%c0_1, %c0_2] : memref<128x128xf32, #tpu.memory_space<vmem>>, vector<128x128xf32>
    %c0_3 = arith.constant 0 : index
    %c0_4 = arith.constant 0 : index
    %8 = vector.load %arg2[%c0_3, %c0_4] : memref<128x256xf32, #tpu.memory_space<vmem>>, vector<128x256xf32>
    %cst = arith.constant dense<0.000000e+00> : vector<128x128xf32>
    %9 = tpu.matmul %8, %6, %cst {dimension_numbers = #tpu.dot_dimension_numbers<[1], [0], [0], [1], [0, 0, 1, 1], [], []>} : vector<128x256xf32>, vector<256x128xf32>, vector<128x128xf32> -> vector<128x128xf32>
    %10 = arith.addf %7, %9 : vector<128x128xf32>
    %c0_5 = arith.constant 0 : index
    %c0_6 = arith.constant 0 : index
    %11 = vector.load %arg8[%c0_5, %c0_6] : memref<128x128xf32, #tpu.memory_space<vmem>>, vector<128x128xf32>
    tpu.vector_store %arg8[%c0_5, %c0_6], %10 {strides = array<i32>} : memref<128x128xf32, #tpu.memory_space<vmem>>, vector<128x128xf32>,
    %c0_i32_7 = arith.constant 0 : i32
    %12 = arith.cmpi eq, %arg1, %c0_i32_7 : i32
    %13 = arith.extui %12 : i1 to i32
    %c0_i32_8 = arith.constant 0 : i32
    %14 = arith.cmpi ne, %13, %c0_i32_8 : i32
    scf.if %14 {
      %c0_9 = arith.constant 0 : index
      %c0_10 = arith.constant 0 : index
      %15 = vector.load %arg8[%c0_9, %c0_10] : memref<128x128xf32, #tpu.memory_space<vmem>>, vector<128x128xf32>
      %c0_11 = arith.constant 0 : index
      %c0_12 = arith.constant 0 : index
      %16 = vector.load %arg4[%c0_11, %c0_12] : memref<1x128xf32, #tpu.memory_space<vmem>>, vector<1x128xf32>
      %17 = vector.broadcast %16 : vector<1x128xf32> to vector<128x128xf32>
      %18 = arith.addf %15, %17 : vector<128x128xf32>
      %cst_13 = arith.constant 0.000000e+00 : f32
      %19 = vector.broadcast %cst_13 : f32 to vector<128x128xf32>
      %20 = arith.maximumf %18, %19 : vector<128x128xf32>
      %c0_14 = arith.constant 0 : index
      %c0_15 = arith.constant 0 : index
      %21 = vector.load %arg6[%c0_14, %c0_15] : memref<128x128xf32, #tpu.memory_space<vmem>>, vector<128x128xf32>
      tpu.vector_store %arg6[%c0_14, %c0_15], %20 {strides = array<i32>} : memref<128x128xf32, #tpu.memory_space<vmem>>, vector<128x128xf32>,
      %c0_16 = arith.constant 0 : index
      %c0_17 = arith.constant 0 : index
      %22 = vector.load %arg5[%c0_16, %c0_17] : memref<128x128xf32, #tpu.memory_space<vmem>>, vector<128x128xf32>
      %23 = arith.maximumf %22, %20 : vector<128x128xf32>
      %c0_18 = arith.constant 0 : index
      %c0_19 = arith.constant 0 : index
      %24 = vector.load %arg7[%c0_18, %c0_19] : memref<128x128xf32, #tpu.memory_space<vmem>>, vector<128x128xf32>
      tpu.vector_store %arg7[%c0_18, %c0_19], %23 {strides = array<i32>} : memref<128x128xf32, #tpu.memory_space<vmem>>, vector<128x128xf32>,
    } else {
    }
    return
  }
  func.func @transform_0(%arg0: i32, %arg1: i32) -> (i32, i32) {
    %c0_i32 = arith.constant 0 : i32
    return %arg0, %arg1 : i32, i32
  }
  func.func @transform_1(%arg0: i32, %arg1: i32) -> (i32, i32) {
    %c0_i32 = arith.constant 0 : i32
    %c0_i32_0 = arith.constant 0 : i32
    %c0_i32_1 = arith.constant 0 : i32
    return %c0_i32, %c0_i32_0 : i32, i32
  }
  func.func @transform_2(%arg0: i32, %arg1: i32) -> (i32, i32) {
    %c0_i32 = arith.constant 0 : i32
    %c0_i32_0 = arith.constant 0 : i32
    %c0_i32_1 = arith.constant 0 : i32
    return %c0_i32, %c0_i32_0 : i32, i32
  }
  func.func @transform_3(%arg0: i32, %arg1: i32) -> (i32, i32) {
    %c0_i32 = arith.constant 0 : i32
    %c0_i32_0 = arith.constant 0 : i32
    return %arg0, %c0_i32 : i32, i32
  }
  func.func @transform_4(%arg0: i32, %arg1: i32) -> (i32, i32) {
    %c0_i32 = arith.constant 0 : i32
    %c0_i32_0 = arith.constant 0 : i32
    return %arg0, %c0_i32 : i32, i32
  }
  func.func @transform_5(%arg0: i32, %arg1: i32) -> (i32, i32) {
    %c0_i32 = arith.constant 0 : i32
    %c0_i32_0 = arith.constant 0 : i32
    return %arg0, %c0_i32 : i32, i32
  }
}

</mosaic_0001>

<bundles_post_ra>
// kernel: jknet_block_forward.5
= control target key start
LH: loop header
LB: loop body
LE: loop exit
PB: predicated region body
PF: predicated region fallthrough
CT: control target
= control target key end

     0   :  { %11 = vsyncpa [#allocation4], 0  ;;  %s1366_s0 = inlined_call_operand.vmem [shape: f32[256,256], index: 0, kind: input, shape index: {}]   ;;  %s1367_s1 = inlined_call_operand.vmem [shape: f32[256,128], index: 1, kind: input, shape index: {}]   ;;  %s1368_s2 = inlined_call_operand.vmem [shape: f32[1,128], index: 2, kind: input, shape index: {}]   ;;  %s1369_s3 = inlined_call_operand.vmem [shape: f32[256,128], index: 3, kind: input, shape index: {}, may-alias: {3,5}]   ;;  %s1370_s4 = inlined_call_operand.hbm [shape: f32[256,128], index: 4, kind: output, shape index: {0}]   ;;  %s1371_s5 = inlined_call_operand.vmem [shape: f32[256,128], index: 5, kind: output, shape index: {1}, may-alias: {3,5}]  }
   0x1   :  { %13 = vsyncpa [#allocation4 + $0x1], 0  ;;  %s1038_s18 = smov 0   ;;  %s1040_s19 = smov 0  }
   0x2   :  { %s1042_s20 = smov 0   ;;  %s1044_s21 = smov 0  }
   0x3   :  { %s1046_s22 = smov 0   ;;  %s1048_s23 = smov 0  }
   0x4 LB: > { %s816_s24 = sadd.s32 4294967295, %s1004_s23   ;;  %s817_s25 = sadd.s32 4294967294, %s1004_s23   ;;  %s1004_s23 = sphi %s1048_s23, %s19_s23   ;;  %s1000_s22 = sphi %s1046_s22, %s1378_s22   ;;  %s996_s21 = sphi %s1044_s21, %s1377_s21   ;;  %s992_s20 = sphi %s1042_s20, %s1376_s20   ;;  %s988_s19 = sphi %s1040_s19, %s1375_s19   ;;  %s984_s18 = sphi %s1038_s18, %s1374_s18  }
   0x5   : > { %s31_s26 = sadd.s32 1, %s1000_s22  ;;  %s134_s27 = sadd.s32 1, %s992_s20 }
   0x6   : > { %p33_p0 = scmp.ge.s32.totalorder %s31_s26, 2  ;;  %p144_p1 = scmp.ne.s32.totalorder %s992_s20, %s988_s19 }
   0x7   : > { %p145_p2 = scmp.eq.s32.totalorder %s816_s24, 1  ;;  %p150_p3 = scmp.ne.s32.totalorder %s988_s19, %s984_s18 }
   0x8   : > { %s1380_s26 = smov (%p33_p0, %s31_s26), 0  ;;  %p151_p5 = scmp.eq.s32.totalorder %s817_s25, 1 }
   0x9   : > { %p1078_p4 = por %p145_p2, %p144_p1  ;;  %s131_s29 = ssub.s32 %s1000_s22, %s1380_s26 }
   0xa   : > { %p820_p6 = scmp.ge.s32.totalorder %s1004_s23, 1  ;;  %p132_p7 = scmp.eq.s32.totalorder %s131_s29, 0 }
   0xb   : > { %p1085_p8 = por %p151_p5, %p150_p3  ;;  %p225_p9 = scmp.lt.s32.totalorder %s1004_s23, 3 }
   0xc   : > { %s1091_s6 = scalar_select %p132_p7, %s992_s20, %s134_s27  }
   0xd   : > { %p226_p10 = pnand %p820_p6, %p225_p9 }
   0xe   : > { %s822_s9 = sshll.u32 (!%p226_p10), %s996_s21, 4  ;;  %s258_s25 = sand.u32 (!%p226_p10), 1, %s988_s19  }
   0xf   : > { %229 = sbr.rel (%p226_p10) target bundleno = 251 (0xfb), region = 36  ;;  %p270_p11 = scmp.lt.s32.totalorder (!%p226_p10), %s822_s9, 31 }
  0x10   : > { %s821_s11 = sshll.u32 (!%p226_p10), %s258_s25, 7  ;;  %s835_s15 = sshll.u32 (!%p226_p10), %s996_s21, 7 }
  0x11   : > { %s1268_s14 = scalar_lea.vmem (!%p226_p10), [#allocation3], %s821_s11  ;;  %s677_s29 = scalar_lea.sflag (!%p226_p10), [#allocation4], %s258_s25 }
  0x12   : > { %s694_s21 = sshll.u32 (!%p226_p10), %s1268_s14, 4  ;;  %s695_s21 = int_to_ptr.vmem [resolvable:$true] %s694_s21 }
  0x14   : > { %v330_v0 = vld [vmem:[%s1367_s1 + $0x78] sm:$0xff]  ;;  %v329_v2 = vld [vmem:[%s1367_s1 + $0x70] sm:$0xff]  ;;  %v328_v4 = vld [vmem:[%s1367_s1 + $0x68] sm:$0xff]  ;;  %s1382_s9 = smov (!%p270_p11, %s822_s9), 31 }
  0x15   : > { %v346_v1 = vld [vmem:[%s1367_s1 + $0xf8] sm:$0xff]  ;;  %836 = vmatpush.msra.mxu2 %v330_v0  ;;  %v345_v3 = vld [vmem:[%s1367_s1 + $0xf0] sm:$0xff]  ;;  %v344_v5 = vld [vmem:[%s1367_s1 + $0xe8] sm:$0xff]  ;;  %395 = vmatpush.msra.mxu0 %v330_v0  ;;  %s834_s16 = sshll.u32 %s1382_s9, 4 }
  0x16   : > { %852 = vmatpush.msra.mxu3 %v346_v1  ;;  %460 = vmatpush.msra.mxu1 %v346_v1  ;;  %v327_v6 = vld [vmem:[%s1367_s1 + $0x60] sm:$0xff]  ;;  %v326_v8 = vld [vmem:[%s1367_s1 + $0x58] sm:$0xff]  ;;  %v325_v10 = vld [vmem:[%s1367_s1 + $0x50] sm:$0xff]  ;;  %s1190_s13 = scalar_lea.vmem %s1366_s0, %s834_s16  ;;  %s826_s16 = sshll.u32 %s1382_s9, 3 }
  0x17   : > { %837 = vmatpush.msra.mxu2 %v329_v2  ;;  %v343_v7 = vld [vmem:[%s1367_s1 + $0xe0] sm:$0xff]  ;;  %396 = vmatpush.msra.mxu0 %v329_v2  ;;  %v342_v9 = vld [vmem:[%s1367_s1 + $0xd8] sm:$0xff]  ;;  %v341_v11 = vld [vmem:[%s1367_s1 + $0xd0] sm:$0xff]  ;;  %s284_s10 = scalar_lea.vmem %s1369_s3, %s826_s16  ;;  %s946_s9 = scalar_lea.hbm %s1370_s4, 256 }
  0x18   : > { %853 = vmatpush.msra.mxu3 %v345_v3  ;;  %461 = vmatpush.msra.mxu1 %v345_v3  ;;  %v324_v12 = vld [vmem:[%s1367_s1 + $0x48] sm:$0xff]  ;;  %v323_v14 = vld [vmem:[%s1367_s1 + $0x40] sm:$0xff]  ;;  %v322_v16 = vld [vmem:[%s1367_s1 + $0x38] sm:$0xff] }
  0x19   : > { %838 = vmatpush.msra.mxu2 %v328_v4  ;;  %397 = vmatpush.msra.mxu0 %v328_v4  ;;  %v340_v13 = vld [vmem:[%s1367_s1 + $0xc8] sm:$0xff]  ;;  %v339_v15 = vld [vmem:[%s1367_s1 + $0xc0] sm:$0xff]  ;;  %v338_v17 = vld [vmem:[%s1367_s1 + $0xb8] sm:$0xff] }
  0x1a   : > { %854 = vmatpush.msra.mxu3 %v344_v5  ;;  %462 = vmatpush.msra.mxu1 %v344_v5  ;;  %v321_v18 = vld [vmem:[%s1367_s1 + $0x30] sm:$0xff]  ;;  %v320_v20 = vld [vmem:[%s1367_s1 + $0x28] sm:$0xff]  ;;  %v319_v22 = vld [vmem:[%s1367_s1 + $0x20] sm:$0xff] }
  0x1b   : > { %839 = vmatpush.msra.mxu2 %v327_v6  ;;  %398 = vmatpush.msra.mxu0 %v327_v6  ;;  %v337_v19 = vld [vmem:[%s1367_s1 + $0xb0] sm:$0xff]  ;;  %v336_v21 = vld [vmem:[%s1367_s1 + $0xa8] sm:$0xff]  ;;  %v335_v23 = vld [vmem:[%s1367_s1 + $0xa0] sm:$0xff] }
  0x1c   : > { %855 = vmatpush.msra.mxu3 %v343_v7  ;;  %463 = vmatpush.msra.mxu1 %v343_v7  ;;  %v318_v24 = vld [vmem:[%s1367_s1 + $0x18] sm:$0xff]  ;;  %v317_v26 = vld [vmem:[%s1367_s1 + $0x10] sm:$0xff]  ;;  %v316_v28 = vld [vmem:[%s1367_s1 + $0x8] sm:$0xff] }
  0x1d   : > { %840 = vmatpush.msra.mxu2 %v326_v8  ;;  %399 = vmatpush.msra.mxu0 %v326_v8  ;;  %v334_v25 = vld [vmem:[%s1367_s1 + $0x98] sm:$0xff]  ;;  %v333_v27 = vld [vmem:[%s1367_s1 + $0x90] sm:$0xff]  ;;  %v332_v29 = vld [vmem:[%s1367_s1 + $0x88] sm:$0xff] }
  0x1e   : > { %856 = vmatpush.msra.mxu3 %v342_v9  ;;  %464 = vmatpush.msra.mxu1 %v342_v9  ;;  %v315_v30 = vld [vmem:[%s1367_s1] sm:$0xff]  ;;  %v380_v33 = vld [vmem:[%s1190_s13 + $0x88] sm:$0xff]  ;;  %v381_v36 = vld [vmem:[%s1190_s13 + $0x90] sm:$0xff] }
  0x1f   : > { %841 = vmatpush.msra.mxu2 %v325_v10  ;;  %400 = vmatpush.msra.mxu0 %v325_v10  ;;  %v331_v31 = vld [vmem:[%s1367_s1 + $0x80] sm:$0xff]  ;;  %v364_v35 = vld [vmem:[%s1190_s13 + $0x8] sm:$0xff]  ;;  %v382_v37 = vld [vmem:[%s1190_s13 + $0x98] sm:$0xff] }
  0x20   : > { %857 = vmatpush.msra.mxu3 %v341_v11  ;;  %465 = vmatpush.msra.mxu1 %v341_v11  ;;  %v379_v32 = vld [vmem:[%s1190_s13 + $0x80] sm:$0xff]  ;;  %v365_v38 = vld [vmem:[%s1190_s13 + $0x10] sm:$0xff]  ;;  %v366_v39 = vld [vmem:[%s1190_s13 + $0x18] sm:$0xff] }
  0x21   : > { %842 = vmatpush.msra.mxu2 %v324_v12  ;;  %401 = vmatpush.msra.mxu0 %v324_v12  ;;  %v363_v34 = vld [vmem:[%s1190_s13] sm:$0xff]  ;;  %v384_v41 = vld [vmem:[%s1190_s13 + $0xa8] sm:$0xff]  ;;  %v385_v44 = vld [vmem:[%s1190_s13 + $0xb0] sm:$0xff] }
  0x22   : > { %858 = vmatpush.msra.mxu3 %v340_v13  ;;  %466 = vmatpush.msra.mxu1 %v340_v13  ;;  %v383_v40 = vld [vmem:[%s1190_s13 + $0xa0] sm:$0xff]  ;;  %v368_v43 = vld [vmem:[%s1190_s13 + $0x28] sm:$0xff]  ;;  %v386_v45 = vld [vmem:[%s1190_s13 + $0xb8] sm:$0xff] }
  0x23   : > { %843 = vmatpush.msra.mxu2 %v323_v14  ;;  %402 = vmatpush.msra.mxu0 %v323_v14  ;;  %v367_v42 = vld [vmem:[%s1190_s13 + $0x20] sm:$0xff]  ;;  %v369_v46 = vld [vmem:[%s1190_s13 + $0x30] sm:$0xff]  ;;  %v370_v47 = vld [vmem:[%s1190_s13 + $0x38] sm:$0xff] }
  0x24   : > { %859 = vmatpush.msra.mxu3 %v339_v15  ;;  %467 = vmatpush.msra.mxu1 %v339_v15  ;;  %v387_v48 = vld [vmem:[%s1190_s13 + $0xc0] sm:$0xff]  ;;  %v388_v49 = vld [vmem:[%s1190_s13 + $0xc8] sm:$0xff]  ;;  %v389_v52 = vld [vmem:[%s1190_s13 + $0xd0] sm:$0xff] }
  0x25   : > { %844 = vmatpush.msra.mxu2 %v322_v16  ;;  %403 = vmatpush.msra.mxu0 %v322_v16  ;;  %v371_v50 = vld [vmem:[%s1190_s13 + $0x40] sm:$0xff]  ;;  %v372_v51 = vld [vmem:[%s1190_s13 + $0x48] sm:$0xff]  ;;  %v390_v53 = vld [vmem:[%s1190_s13 + $0xd8] sm:$0xff] }
  0x26   : > { %860 = vmatpush.msra.mxu3 %v338_v17  ;;  %468 = vmatpush.msra.mxu1 %v338_v17  ;;  %v373_v54 = vld [vmem:[%s1190_s13 + $0x50] sm:$0xff]  ;;  %v374_v55 = vld [vmem:[%s1190_s13 + $0x58] sm:$0xff]  ;;  %v391_v56 = vld [vmem:[%s1190_s13 + $0xe0] sm:$0xff] }
  0x27   : > { %845 = vmatpush.msra.mxu2 %v321_v18  ;;  %404 = vmatpush.msra.mxu0 %v321_v18  ;;  %v392_v57 = vld [vmem:[%s1190_s13 + $0xe8] sm:$0xff]  ;;  %v375_v58 = vld [vmem:[%s1190_s13 + $0x60] sm:$0xff]  ;;  %v393_v60 = vld [vmem:[%s1190_s13 + $0xf0] sm:$0xff] }
  0x28   : > { %861 = vmatpush.msra.mxu3 %v337_v19  ;;  %469 = vmatpush.msra.mxu1 %v337_v19  ;;  %v376_v59 = vld [vmem:[%s1190_s13 + $0x68] sm:$0xff]  ;;  %v394_v61 = vld [vmem:[%s1190_s13 + $0xf8] sm:$0xff]  ;;  %v377_v62 = vld [vmem:[%s1190_s13 + $0x70] sm:$0xff] }
  0x29   : > { %846 = vmatpush.msra.mxu2 %v320_v20  ;;  %405 = vmatpush.msra.mxu0 %v320_v20  ;;  %v378_v63 = vld [vmem:[%s1190_s13 + $0x78] sm:$0xff]  ;;  %v1235_v0 = vld [vmem:[%s1368_s2] ss:$0 sm:$0xff]  ;;  %v629_v8 = vld [vmem:[%s284_s10 + $0x8] sm:$0xff]  ;;  %s1260_s13 = scalar_lea.vmem %s1371_s5, %s826_s16  ;;  %s693_s16 = scalar_lea.hbm %s1370_s4, %s835_s15 }
  0x2a   : > { %862 = vmatpush.msra.mxu3 %v336_v21  ;;  %470 = vmatpush.msra.mxu1 %v336_v21  ;;  %v628_v5 = vld [vmem:[%s284_s10] sm:$0xff]  ;;  %v637_v9 = vld [vmem:[%s284_s10 + $0x48] sm:$0xff]  ;;  %v630_v10 = vld [vmem:[%s284_s10 + $0x10] sm:$0xff]  ;;  %s696_s27 = sshll.u32 %s693_s16, 4  ;;  %s697_s27 = int_to_ptr.hbm [resolvable:$true] %s696_s27 }
  0x2b   : > { %847 = vmatpush.msra.mxu2 %v319_v22  ;;  %406 = vmatpush.msra.mxu0 %v319_v22  ;;  %v638_v11 = vld [vmem:[%s284_s10 + $0x50] sm:$0xff]  ;;  %v1243_v12 = vld [vmem:[%s284_s10 + $0x18] sm:$0xff]  ;;  %v1247_v14 = vld [vmem:[%s284_s10 + $0x20] sm:$0xff]  ;;  %s940_s7 = sshra.s32 %s697_s27, 4  ;;  %s941_s7 = int_to_ptr.hbm [resolvable:$true] %s940_s7 }
  0x2c   : > { %863 = vmatpush.msra.mxu3 %v335_v23  ;;  %471 = vmatpush.msra.mxu1 %v335_v23  ;;  %v1245_v13 = vld [vmem:[%s284_s10 + $0x58] sm:$0xff]  ;;  %v1249_v15 = vld [vmem:[%s284_s10 + $0x60] sm:$0xff]  ;;  %v1251_v18 = vld [vmem:[%s284_s10 + $0x28] sm:$0xff]  ;;  %s942_s8 = scalar_lea.hbm %s941_s7, 128  ;;  %p947_p1 = scmp.lt.s32.totalorder %s941_s7, %s1370_s4 }
  0x2d   : > { %848 = vmatpush.msra.mxu2 %v318_v24  ;;  %407 = vmatpush.msra.mxu0 %v318_v24  ;;  %v1253_v19 = vld [vmem:[%s284_s10 + $0x68] sm:$0xff]  ;;  %v1255_v20 = vld [vmem:[%s284_s10 + $0x30] sm:$0xff]  ;;  %v1264_v22 = vld [vmem:[%s284_s10 + $0x38] sm:$0xff]  ;;  %p943_p12 = scmp.ne.s32.totalorder %s941_s7, %s942_s8  ;;  %p948_p2 = scmp.lt.s32.totalorder %s946_s9, %s942_s8 }
  0x2e   : > { %864 = vmatpush.msra.mxu3 %v334_v25  ;;  %472 = vmatpush.msra.mxu1 %v334_v25  ;;  %v1262_v21 = vld [vmem:[%s284_s10 + $0x70] sm:$0xff]  ;;  %v1266_v23 = vld [vmem:[%s284_s10 + $0x78] sm:$0xff] }
  0x2f   : > { %849 = vmatpush.msra.mxu2 %v317_v26  ;;  %408 = vmatpush.msra.mxu0 %v317_v26  ;;  %v636_v26 = vld [vmem:[%s284_s10 + $0x40] sm:$0xff]  ;;  %p944_p13 = pnand %p943_p12, %p1078_p4  ;;  %p949_p3 = por %p948_p2, %p947_p1 }
  0x30   : > { %865 = vmatpush.msra.mxu3 %v333_v27  ;;  %473 = vmatpush.msra.mxu1 %v333_v27 }
  0x31   : > { %850 = vmatpush.msra.mxu2 %v316_v28  ;;  %409 = vmatpush.msra.mxu0 %v316_v28  ;;  %p945_p0 = pneg %p944_p13 }
  0x32   : > { %866 = vmatpush.msra.mxu3 %v332_v29  ;;  %474 = vmatpush.msra.mxu1 %v332_v29 }
  0x33   : > { %851 = vmatpush.msra.mxu2 %v315_v30  ;;  %410 = vmatpush.msra.mxu0 %v315_v30  ;;  %p950_p5 = pnand %p949_p3, %p945_p0 }
  0x34   : > { %867 = vmatpush.msra.mxu3 %v331_v31  ;;  %435 = vmatmul.f32.vlgmr.msra.gmra.mxu2 %v379_v32 }
  0x35   : > { %500 = vmatmul.f32.vlgmr.msra.gmra.mxu3 %v380_v33  ;;  %475 = vmatpush.msra.mxu1 %v331_v31 }
  0x36   : > { %411 = vmatmul.f32.vlgmr.msra.gmra.mxu0 %v363_v34  ;;  %476 = vmatmul.f32.vlgmr.msra.gmra.mxu1 %v364_v35 }
  0x3c   : > { %438 = vmatmul.f32.gmra.mxu2 %v381_v36 }
  0x3d   : > { %503 = vmatmul.f32.gmra.mxu3 %v382_v37 }
  0x3e   : > { %414 = vmatmul.f32.gmra.mxu0 %v365_v38  ;;  %479 = vmatmul.f32.gmra.mxu1 %v366_v39 }
  0x44   : > { %441 = vmatmul.f32.gmra.mxu2 %v383_v40 }
  0x45   : > { %506 = vmatmul.f32.gmra.mxu3 %v384_v41 }
  0x46   : > { %417 = vmatmul.f32.gmra.mxu0 %v367_v42  ;;  %482 = vmatmul.f32.gmra.mxu1 %v368_v43 }
  0x4c   : > { %444 = vmatmul.f32.gmra.mxu2 %v385_v44 }
  0x4d   : > { %509 = vmatmul.f32.gmra.mxu3 %v386_v45 }
  0x4e   : > { %420 = vmatmul.f32.gmra.mxu0 %v369_v46  ;;  %485 = vmatmul.f32.gmra.mxu1 %v370_v47 }
  0x54   : > { %447 = vmatmul.f32.gmra.mxu2 %v387_v48 }
  0x55   : > { %512 = vmatmul.f32.gmra.mxu3 %v388_v49 }
  0x56   : > { %423 = vmatmul.f32.gmra.mxu0 %v371_v50  ;;  %488 = vmatmul.f32.gmra.mxu1 %v372_v51 }
  0x5c   : > { %450 = vmatmul.f32.gmra.mxu2 %v389_v52 }
  0x5d   : > { %515 = vmatmul.f32.gmra.mxu3 %v390_v53 }
  0x5e   : > { %426 = vmatmul.f32.gmra.mxu0 %v373_v54  ;;  %491 = vmatmul.f32.gmra.mxu1 %v374_v55 }
  0x64   : > { %453 = vmatmul.f32.gmra.mxu2 %v391_v56 }
  0x65   : > { %518 = vmatmul.f32.gmra.mxu3 %v392_v57 }
  0x66   : > { %429 = vmatmul.f32.gmra.mxu0 %v375_v58  ;;  %494 = vmatmul.f32.gmra.mxu1 %v376_v59 }
  0x6c   : > { %456 = vmatmul.f32.gmra.mxu2 %v393_v60 }
  0x6d   : > { %521 = vmatmul.f32.gmra.mxu3 %v394_v61 }
  0x6e   : > { %432 = vmatmul.f32.gmra.mxu0 %v377_v62  ;;  %497 = vmatmul.f32.gmra.mxu1 %v378_v63 }
  0xb3   : > { %v412_v1 = vpop.f32.mrf.mxu0  ;;  %v477_v2 = vpop.f32.mrf.mxu1 }
  0xb4   : > { %v478_v3 = vadd.f32 %v477_v2, %v412_v1 }
  0xb6   : > { %v580_v4 = vadd.f32 %v1235_v0, %v478_v3 }
  0xb7   : > { %v436_v6 = vpop.f32.mrf.mxu2 }
  0xb8   : > { %v501_v7 = vpop.f32.mrf.mxu3  ;;  %v596_v16 = vmax.f32 %v580_v4, 0.0 }
  0xb9   : > { %v502_v17 = vadd.f32 %v501_v7, %v436_v6 }
  0xba   : > { %612 = vst [vmem:[%s1268_s14] sm:$0xff] %v596_v16  ;;  %v644_v24 = vmax.f32 %v628_v5, %v596_v16 }
  0xbb   : > { %v588_v25 = vadd.f32 %v1235_v0, %v502_v17  ;;  %v415_v27 = vpop.f32.mrf.mxu0  ;;  %v480_v28 = vpop.f32.mrf.mxu1 }
  0xbc   : > { %v481_v30 = vadd.f32 %v480_v28, %v415_v27  ;;  %660 = vst [vmem:[%s1260_s13] sm:$0xff] %v644_v24 }
  0xbd   : > { %v604_v29 = vmax.f32 %v588_v25, 0.0 }
  0xbe   : > { %v581_v32 = vadd.f32 %v1235_v0, %v481_v30 }
  0xbf   : > { %620 = vst [vmem:[%s1268_s14 + $0x40] sm:$0xff] %v604_v29  ;;  %v652_v31 = vmax.f32 %v636_v26, %v604_v29  ;;  %v439_v33 = vpop.f32.mrf.mxu2 }
  0xc0   : > { %v504_v34 = vpop.f32.mrf.mxu3  ;;  %v597_v35 = vmax.f32 %v581_v32, 0.0 }
  0xc1   : > { %v505_v36 = vadd.f32 %v504_v34, %v439_v33  ;;  %668 = vst [vmem:[%s1260_s13 + $0x40] sm:$0xff] %v652_v31 }
  0xc2   : > { %613 = vst [vmem:[%s1268_s14 + $0x8] sm:$0xff] %v597_v35  ;;  %v645_v37 = vmax.f32 %v629_v8, %v597_v35 }
  0xc3   : > { %v589_v38 = vadd.f32 %v1235_v0, %v505_v36  ;;  %v418_v39 = vpop.f32.mrf.mxu0  ;;  %v483_v40 = vpop.f32.mrf.mxu1 }
  0xc4   : > { %v484_v42 = vadd.f32 %v483_v40, %v418_v39  ;;  %661 = vst [vmem:[%s1260_s13 + $0x8] sm:$0xff] %v645_v37 }
  0xc5   : > { %v605_v41 = vmax.f32 %v589_v38, 0.0 }
  0xc6   : > { %v582_v44 = vadd.f32 %v1235_v0, %v484_v42 }
  0xc7   : > { %621 = vst [vmem:[%s1268_s14 + $0x48] sm:$0xff] %v605_v41  ;;  %v653_v43 = vmax.f32 %v637_v9, %v605_v41  ;;  %v442_v45 = vpop.f32.mrf.mxu2 }
  0xc8   : > { %v507_v46 = vpop.f32.mrf.mxu3  ;;  %v598_v47 = vmax.f32 %v582_v44, 0.0 }
  0xc9   : > { %v508_v48 = vadd.f32 %v507_v46, %v442_v45  ;;  %669 = vst [vmem:[%s1260_s13 + $0x48] sm:$0xff] %v653_v43 }
  0xca   : > { %614 = vst [vmem:[%s1268_s14 + $0x10] sm:$0xff] %v598_v47  ;;  %v646_v49 = vmax.f32 %v630_v10, %v598_v47 }
  0xcb   : > { %v590_v50 = vadd.f32 %v1235_v0, %v508_v48  ;;  %v421_v51 = vpop.f32.mrf.mxu0  ;;  %v486_v52 = vpop.f32.mrf.mxu1 }
  0xcc   : > { %v487_v54 = vadd.f32 %v486_v52, %v421_v51  ;;  %662 = vst [vmem:[%s1260_s13 + $0x10] sm:$0xff] %v646_v49 }
  0xcd   : > { %v606_v53 = vmax.f32 %v590_v50, 0.0 }
  0xce   : > { %v583_v56 = vadd.f32 %v1235_v0, %v487_v54 }
  0xcf   : > { %622 = vst [vmem:[%s1268_s14 + $0x50] sm:$0xff] %v606_v53  ;;  %v654_v55 = vmax.f32 %v638_v11, %v606_v53  ;;  %v445_v57 = vpop.f32.mrf.mxu2 }
  0xd0   : > { %v510_v58 = vpop.f32.mrf.mxu3  ;;  %v599_v59 = vmax.f32 %v583_v56, 0.0 }
  0xd1   : > { %v511_v60 = vadd.f32 %v510_v58, %v445_v57  ;;  %670 = vst [vmem:[%s1260_s13 + $0x50] sm:$0xff] %v654_v55 }
  0xd2   : > { %615 = vst [vmem:[%s1268_s14 + $0x18] sm:$0xff] %v599_v59  ;;  %v647_v61 = vmax.f32 %v1243_v12, %v599_v59 }
  0xd3   : > { %v591_v62 = vadd.f32 %v1235_v0, %v511_v60  ;;  %v424_v63 = vpop.f32.mrf.mxu0  ;;  %v489_v1 = vpop.f32.mrf.mxu1 }
  0xd4   : > { %v490_v3 = vadd.f32 %v489_v1, %v424_v63  ;;  %663 = vst [vmem:[%s1260_s13 + $0x18] sm:$0xff] %v647_v61 }
  0xd5   : > { %v607_v2 = vmax.f32 %v591_v62, 0.0 }
  0xd6   : > { %v584_v5 = vadd.f32 %v1235_v0, %v490_v3 }
  0xd7   : > { %623 = vst [vmem:[%s1268_s14 + $0x58] sm:$0xff] %v607_v2  ;;  %v655_v4 = vmax.f32 %v1245_v13, %v607_v2  ;;  %v448_v6 = vpop.f32.mrf.mxu2 }
  0xd8   : > { %v513_v7 = vpop.f32.mrf.mxu3  ;;  %v600_v8 = vmax.f32 %v584_v5, 0.0 }
  0xd9   : > { %v514_v9 = vadd.f32 %v513_v7, %v448_v6  ;;  %671 = vst [vmem:[%s1260_s13 + $0x58] sm:$0xff] %v655_v4 }
  0xda   : > { %616 = vst [vmem:[%s1268_s14 + $0x20] sm:$0xff] %v600_v8  ;;  %v648_v10 = vmax.f32 %v1247_v14, %v600_v8 }
  0xdb   : > { %v592_v11 = vadd.f32 %v1235_v0, %v514_v9  ;;  %v427_v12 = vpop.f32.mrf.mxu0  ;;  %v492_v16 = vpop.f32.mrf.mxu1 }
  0xdc   : > { %v493_v24 = vadd.f32 %v492_v16, %v427_v12  ;;  %664 = vst [vmem:[%s1260_s13 + $0x20] sm:$0xff] %v648_v10 }
  0xdd   : > { %v608_v17 = vmax.f32 %v592_v11, 0.0 }
  0xde   : > { %v585_v25 = vadd.f32 %v1235_v0, %v493_v24 }
  0xdf   : > { %624 = vst [vmem:[%s1268_s14 + $0x60] sm:$0xff] %v608_v17  ;;  %v656_v13 = vmax.f32 %v1249_v15, %v608_v17  ;;  %v451_v26 = vpop.f32.mrf.mxu2 }
  0xe0   : > { %v516_v27 = vpop.f32.mrf.mxu3  ;;  %v601_v28 = vmax.f32 %v585_v25, 0.0 }
  0xe1   : > { %v517_v29 = vadd.f32 %v516_v27, %v451_v26  ;;  %672 = vst [vmem:[%s1260_s13 + $0x60] sm:$0xff] %v656_v13 }
  0xe2   : > { %617 = vst [vmem:[%s1268_s14 + $0x28] sm:$0xff] %v601_v28  ;;  %v649_v14 = vmax.f32 %v1251_v18, %v601_v28 }
  0xe3   : > { %v593_v30 = vadd.f32 %v1235_v0, %v517_v29  ;;  %v430_v31 = vpop.f32.mrf.mxu0  ;;  %v495_v32 = vpop.f32.mrf.mxu1 }
  0xe4   : > { %v496_v34 = vadd.f32 %v495_v32, %v430_v31  ;;  %665 = vst [vmem:[%s1260_s13 + $0x28] sm:$0xff] %v649_v14 }
  0xe5   : > { %v609_v33 = vmax.f32 %v593_v30, 0.0 }
  0xe6   : > { %v586_v35 = vadd.f32 %v1235_v0, %v496_v34 }
  0xe7   : > { %625 = vst [vmem:[%s1268_s14 + $0x68] sm:$0xff] %v609_v33  ;;  %v657_v15 = vmax.f32 %v1253_v19, %v609_v33  ;;  %v454_v36 = vpop.f32.mrf.mxu2 }
  0xe8   : > { %v519_v37 = vpop.f32.mrf.mxu3  ;;  %v602_v38 = vmax.f32 %v586_v35, 0.0 }
  0xe9   : > { %v520_v39 = vadd.f32 %v519_v37, %v454_v36  ;;  %673 = vst [vmem:[%s1260_s13 + $0x68] sm:$0xff] %v657_v15 }
  0xea   : > { %618 = vst [vmem:[%s1268_s14 + $0x30] sm:$0xff] %v602_v38  ;;  %v650_v18 = vmax.f32 %v1255_v20, %v602_v38 }
  0xeb   : > { %v594_v40 = vadd.f32 %v1235_v0, %v520_v39  ;;  %v433_v41 = vpop.f32.mrf.mxu0  ;;  %v498_v42 = vpop.f32.mrf.mxu1 }
  0xec   : > { %v499_v43 = vadd.f32 %v498_v42, %v433_v41  ;;  %666 = vst [vmem:[%s1260_s13 + $0x30] sm:$0xff] %v650_v18 }
  0xed   : > { %v610_v19 = vmax.f32 %v594_v40, 0.0 }
  0xee   : > { %v587_v20 = vadd.f32 %v1235_v0, %v499_v43 }
  0xef   : > { %626 = vst [vmem:[%s1268_s14 + $0x70] sm:$0xff] %v610_v19  ;;  %v658_v44 = vmax.f32 %v1262_v21, %v610_v19  ;;  %v457_v45 = vpop.f32.mrf.mxu2 }
  0xf0   : > { %v522_v46 = vpop.f32.mrf.mxu3  ;;  %v603_v47 = vmax.f32 %v587_v20, 0.0 }
  0xf1   : > { %v523_v48 = vadd.f32 %v522_v46, %v457_v45  ;;  %674 = vst [vmem:[%s1260_s13 + $0x70] sm:$0xff] %v658_v44 }
  0xf2   : > { %619 = vst [vmem:[%s1268_s14 + $0x38] sm:$0xff] %v603_v47  ;;  %v651_v49 = vmax.f32 %v1264_v22, %v603_v47 }
  0xf3   : > { %v595_v50 = vadd.f32 %v1235_v0, %v523_v48 }
  0xf4   : > { %667 = vst [vmem:[%s1260_s13 + $0x38] sm:$0xff] %v651_v49 }
  0xf5   : > { %v611_v21 = vmax.f32 %v595_v50, 0.0 }
  0xf7   : > { %627 = vst [vmem:[%s1268_s14 + $0x78] sm:$0xff] %v611_v21  ;;  %v659_v51 = vmax.f32 %v1266_v23, %v611_v21 }
  0xf8   : > { %953 = shalt.err (!%p950_p5)
}
  0xf9   : > { %s1006_s25 = smov 128   ;;  %s1007_s14 = smov 8   ;;  %675 = vst [vmem:[%s1260_s13 + $0x78] sm:$0xff] %v659_v51 }
  0xfa   : > { %868 = dma.vmem_to_hbm [thread:$0]  (%p1078_p4), %s695_s21, 2048, %s697_s27, %s677_s29, %s1006_s25, %s1006_s25, %s1007_s14  }
  0xfb PF: > { %p874_p6 = scmp.ge.s32.totalorder %s1004_s23, 2  ;;  %s715_s17 = sand.u32 1, %s984_s18  }
  0xfc   : > { %s716_s24 = scalar_lea.sflag [#allocation4], %s715_s17 }
  0xfd   : > { %p871_p7 = pnand %p874_p6, %p1085_p8 }
  0xff   : > { %p872_p9 = pneg %p871_p7 }
 0x101   : > { %979 = dma.done.wait (%p872_p9), %s716_s24, 2048  }
 0x102   : > { %981 = vsyncadd (%p872_p9), %s716_s24, 4294965248  ;;  %s19_s23 = sadd.s32 1, %s1004_s23   ;;  %s1374_s18 = smov %s988_s19 }
 0x103   : > { %p16_p10 = scmp.ge.s32.totalorder %s19_s23, 4   ;;  %s1375_s19 = smov %s992_s20 }
 0x104   : > { %s1376_s20 = smov %s1091_s6  ;;  %s1377_s21 = smov %s1000_s22 }
 0x105   : > { %s1378_s22 = smov %s1380_s26  ;;  %18 = sbr.rel (!%p16_p10) target bundleno = 4 (0x4), region = 95 }
 0x10a   :  { %730 = vsyncpa [#allocation4], 1 }
 0x10b   :  { %732 = vsyncpa [#allocation4 + $0x1], 1 }

// kernel: jknet_block_forward.3
= control target key start
LH: loop header
LB: loop body
LE: loop exit
PB: predicated region body
PF: predicated region fallthrough
CT: control target
= control target key end

     0   :  { %s925_s18 = smov 0   ;;  %s927_s19 = smov 0   ;;  %s1188_s0 = inlined_call_operand.vmem [shape: f32[256,256], index: 0, kind: input, shape index: {}]   ;;  %s1189_s1 = inlined_call_operand.vmem [shape: f32[256,128], index: 1, kind: input, shape index: {}]   ;;  %s1190_s2 = inlined_call_operand.vmem [shape: f32[1,128], index: 2, kind: input, shape index: {}]   ;;  %s1191_s3 = inlined_call_operand.vmem [shape: f32[256,128], index: 3, kind: input, shape index: {}, may-alias: {3,5}]   ;;  %s1192_s4 = inlined_call_operand.vmem [shape: f32[256,128], index: 4, kind: output, shape index: {0}]   ;;  %s1193_s5 = inlined_call_operand.vmem [shape: f32[256,128], index: 5, kind: output, shape index: {1}, may-alias: {3,5}]  }
   0x1   :  { %s929_s20 = smov 0  }
   0x2 LB: > { %s28_s21 = sadd.s32 1, %s889_s19  ;;  %p801_p0 = scmp.ge.s32.totalorder %s893_s20, 1  ;;  %s893_s20 = sphi %s929_s20, %s16_s20   ;;  %s889_s19 = sphi %s927_s19, %s1195_s19   ;;  %s885_s18 = sphi %s925_s18, %s1194_s18  }
   0x3   : > { %p30_p1 = scmp.ge.s32.totalorder %s28_s21, 2  ;;  %p222_p2 = scmp.lt.s32.totalorder %s893_s20, 3 }
   0x5   : > { %s1197_s21 = smov (%p30_p1, %s28_s21), 0  ;;  %p223_p3 = pnand %p801_p0, %p222_p2 }
   0x6   : > { %s802_s8 = sshll.u32 (!%p223_p3), %s885_s18, 4 }
   0x7   : > { %226 = sbr.rel (%p223_p3) target bundleno = 242 (0xf2), region = 36  ;;  %p267_p4 = scmp.lt.s32.totalorder (!%p223_p3), %s802_s8, 31 }
   0xc   : > { %v332_v0 = vld [vmem:[%s1189_s1 + $0x78] sm:$0xff]  ;;  %v331_v2 = vld [vmem:[%s1189_s1 + $0x70] sm:$0xff]  ;;  %v330_v4 = vld [vmem:[%s1189_s1 + $0x68] sm:$0xff]  ;;  %s1199_s8 = smov (!%p267_p4, %s802_s8), 31 }
   0xd   : > { %v348_v1 = vld [vmem:[%s1189_s1 + $0xf8] sm:$0xff]  ;;  %814 = vmatpush.msra.mxu2 %v332_v0  ;;  %v347_v3 = vld [vmem:[%s1189_s1 + $0xf0] sm:$0xff]  ;;  %v346_v5 = vld [vmem:[%s1189_s1 + $0xe8] sm:$0xff]  ;;  %397 = vmatpush.msra.mxu0 %v332_v0  ;;  %s813_s7 = sshll.u32 %s1199_s8, 4  ;;  %s806_s27 = sshll.u32 %s1199_s8, 3 }
   0xe   : > { %830 = vmatpush.msra.mxu3 %v348_v1  ;;  %462 = vmatpush.msra.mxu1 %v348_v1  ;;  %v329_v6 = vld [vmem:[%s1189_s1 + $0x60] sm:$0xff]  ;;  %v328_v8 = vld [vmem:[%s1189_s1 + $0x58] sm:$0xff]  ;;  %v327_v10 = vld [vmem:[%s1189_s1 + $0x50] sm:$0xff]  ;;  %s1042_s22 = scalar_lea.vmem %s1188_s0, %s813_s7  ;;  %s281_s7 = scalar_lea.vmem %s1191_s3, %s806_s27 }
   0xf   : > { %815 = vmatpush.msra.mxu2 %v331_v2  ;;  %v345_v7 = vld [vmem:[%s1189_s1 + $0xe0] sm:$0xff]  ;;  %398 = vmatpush.msra.mxu0 %v331_v2  ;;  %v344_v9 = vld [vmem:[%s1189_s1 + $0xd8] sm:$0xff]  ;;  %v343_v11 = vld [vmem:[%s1189_s1 + $0xd0] sm:$0xff]  ;;  %s1095_s8 = scalar_lea.vmem %s1192_s4, %s806_s27  ;;  %s1114_s13 = scalar_lea.vmem %s1193_s5, %s806_s27 }
  0x10   : > { %831 = vmatpush.msra.mxu3 %v347_v3  ;;  %463 = vmatpush.msra.mxu1 %v347_v3  ;;  %v326_v12 = vld [vmem:[%s1189_s1 + $0x48] sm:$0xff]  ;;  %v325_v14 = vld [vmem:[%s1189_s1 + $0x40] sm:$0xff]  ;;  %v324_v16 = vld [vmem:[%s1189_s1 + $0x38] sm:$0xff] }
  0x11   : > { %816 = vmatpush.msra.mxu2 %v330_v4  ;;  %399 = vmatpush.msra.mxu0 %v330_v4  ;;  %v342_v13 = vld [vmem:[%s1189_s1 + $0xc8] sm:$0xff]  ;;  %v341_v15 = vld [vmem:[%s1189_s1 + $0xc0] sm:$0xff]  ;;  %v340_v17 = vld [vmem:[%s1189_s1 + $0xb8] sm:$0xff] }
  0x12   : > { %832 = vmatpush.msra.mxu3 %v346_v5  ;;  %464 = vmatpush.msra.mxu1 %v346_v5  ;;  %v323_v18 = vld [vmem:[%s1189_s1 + $0x30] sm:$0xff]  ;;  %v322_v20 = vld [vmem:[%s1189_s1 + $0x28] sm:$0xff]  ;;  %v321_v22 = vld [vmem:[%s1189_s1 + $0x20] sm:$0xff] }
  0x13   : > { %817 = vmatpush.msra.mxu2 %v329_v6  ;;  %400 = vmatpush.msra.mxu0 %v329_v6  ;;  %v339_v19 = vld [vmem:[%s1189_s1 + $0xb0] sm:$0xff]  ;;  %v338_v21 = vld [vmem:[%s1189_s1 + $0xa8] sm:$0xff]  ;;  %v337_v23 = vld [vmem:[%s1189_s1 + $0xa0] sm:$0xff] }
  0x14   : > { %833 = vmatpush.msra.mxu3 %v345_v7  ;;  %465 = vmatpush.msra.mxu1 %v345_v7  ;;  %v320_v24 = vld [vmem:[%s1189_s1 + $0x18] sm:$0xff]  ;;  %v319_v26 = vld [vmem:[%s1189_s1 + $0x10] sm:$0xff]  ;;  %v318_v28 = vld [vmem:[%s1189_s1 + $0x8] sm:$0xff] }
  0x15   : > { %818 = vmatpush.msra.mxu2 %v328_v8  ;;  %401 = vmatpush.msra.mxu0 %v328_v8  ;;  %v336_v25 = vld [vmem:[%s1189_s1 + $0x98] sm:$0xff]  ;;  %v335_v27 = vld [vmem:[%s1189_s1 + $0x90] sm:$0xff]  ;;  %v334_v29 = vld [vmem:[%s1189_s1 + $0x88] sm:$0xff] }
  0x16   : > { %834 = vmatpush.msra.mxu3 %v344_v9  ;;  %466 = vmatpush.msra.mxu1 %v344_v9  ;;  %v317_v30 = vld [vmem:[%s1189_s1] sm:$0xff]  ;;  %v382_v33 = vld [vmem:[%s1042_s22 + $0x88] sm:$0xff]  ;;  %v383_v36 = vld [vmem:[%s1042_s22 + $0x90] sm:$0xff] }
  0x17   : > { %819 = vmatpush.msra.mxu2 %v327_v10  ;;  %402 = vmatpush.msra.mxu0 %v327_v10  ;;  %v333_v31 = vld [vmem:[%s1189_s1 + $0x80] sm:$0xff]  ;;  %v366_v35 = vld [vmem:[%s1042_s22 + $0x8] sm:$0xff]  ;;  %v384_v37 = vld [vmem:[%s1042_s22 + $0x98] sm:$0xff] }
  0x18   : > { %835 = vmatpush.msra.mxu3 %v343_v11  ;;  %467 = vmatpush.msra.mxu1 %v343_v11  ;;  %v381_v32 = vld [vmem:[%s1042_s22 + $0x80] sm:$0xff]  ;;  %v367_v38 = vld [vmem:[%s1042_s22 + $0x10] sm:$0xff]  ;;  %v368_v39 = vld [vmem:[%s1042_s22 + $0x18] sm:$0xff] }
  0x19   : > { %820 = vmatpush.msra.mxu2 %v326_v12  ;;  %403 = vmatpush.msra.mxu0 %v326_v12  ;;  %v365_v34 = vld [vmem:[%s1042_s22] sm:$0xff]  ;;  %v386_v41 = vld [vmem:[%s1042_s22 + $0xa8] sm:$0xff]  ;;  %v387_v44 = vld [vmem:[%s1042_s22 + $0xb0] sm:$0xff] }
  0x1a   : > { %836 = vmatpush.msra.mxu3 %v342_v13  ;;  %468 = vmatpush.msra.mxu1 %v342_v13  ;;  %v385_v40 = vld [vmem:[%s1042_s22 + $0xa0] sm:$0xff]  ;;  %v370_v43 = vld [vmem:[%s1042_s22 + $0x28] sm:$0xff]  ;;  %v388_v45 = vld [vmem:[%s1042_s22 + $0xb8] sm:$0xff] }
  0x1b   : > { %821 = vmatpush.msra.mxu2 %v325_v14  ;;  %404 = vmatpush.msra.mxu0 %v325_v14  ;;  %v369_v42 = vld [vmem:[%s1042_s22 + $0x20] sm:$0xff]  ;;  %v371_v46 = vld [vmem:[%s1042_s22 + $0x30] sm:$0xff]  ;;  %v372_v47 = vld [vmem:[%s1042_s22 + $0x38] sm:$0xff] }
  0x1c   : > { %837 = vmatpush.msra.mxu3 %v341_v15  ;;  %469 = vmatpush.msra.mxu1 %v341_v15  ;;  %v389_v48 = vld [vmem:[%s1042_s22 + $0xc0] sm:$0xff]  ;;  %v390_v49 = vld [vmem:[%s1042_s22 + $0xc8] sm:$0xff]  ;;  %v391_v52 = vld [vmem:[%s1042_s22 + $0xd0] sm:$0xff] }
  0x1d   : > { %822 = vmatpush.msra.mxu2 %v324_v16  ;;  %405 = vmatpush.msra.mxu0 %v324_v16  ;;  %v373_v50 = vld [vmem:[%s1042_s22 + $0x40] sm:$0xff]  ;;  %v374_v51 = vld [vmem:[%s1042_s22 + $0x48] sm:$0xff]  ;;  %v392_v53 = vld [vmem:[%s1042_s22 + $0xd8] sm:$0xff] }
  0x1e   : > { %838 = vmatpush.msra.mxu3 %v340_v17  ;;  %470 = vmatpush.msra.mxu1 %v340_v17  ;;  %v375_v54 = vld [vmem:[%s1042_s22 + $0x50] sm:$0xff]  ;;  %v376_v55 = vld [vmem:[%s1042_s22 + $0x58] sm:$0xff]  ;;  %v393_v56 = vld [vmem:[%s1042_s22 + $0xe0] sm:$0xff] }
  0x1f   : > { %823 = vmatpush.msra.mxu2 %v323_v18  ;;  %406 = vmatpush.msra.mxu0 %v323_v18  ;;  %v394_v57 = vld [vmem:[%s1042_s22 + $0xe8] sm:$0xff]  ;;  %v377_v58 = vld [vmem:[%s1042_s22 + $0x60] sm:$0xff]  ;;  %v395_v60 = vld [vmem:[%s1042_s22 + $0xf0] sm:$0xff] }
  0x20   : > { %839 = vmatpush.msra.mxu3 %v339_v19  ;;  %471 = vmatpush.msra.mxu1 %v339_v19  ;;  %v378_v59 = vld [vmem:[%s1042_s22 + $0x68] sm:$0xff]  ;;  %v396_v61 = vld [vmem:[%s1042_s22 + $0xf8] sm:$0xff]  ;;  %v379_v62 = vld [vmem:[%s1042_s22 + $0x70] sm:$0xff] }
  0x21   : > { %824 = vmatpush.msra.mxu2 %v322_v20  ;;  %407 = vmatpush.msra.mxu0 %v322_v20  ;;  %v380_v63 = vld [vmem:[%s1042_s22 + $0x78] sm:$0xff]  ;;  %v1086_v0 = vld [vmem:[%s1190_s2] ss:$0 sm:$0xff]  ;;  %v631_v8 = vld [vmem:[%s281_s7 + $0x8] sm:$0xff] }
  0x22   : > { %840 = vmatpush.msra.mxu3 %v338_v21  ;;  %472 = vmatpush.msra.mxu1 %v338_v21  ;;  %v630_v5 = vld [vmem:[%s281_s7] sm:$0xff]  ;;  %v639_v9 = vld [vmem:[%s281_s7 + $0x48] sm:$0xff]  ;;  %v632_v10 = vld [vmem:[%s281_s7 + $0x10] sm:$0xff] }
  0x23   : > { %825 = vmatpush.msra.mxu2 %v321_v22  ;;  %408 = vmatpush.msra.mxu0 %v321_v22  ;;  %v640_v11 = vld [vmem:[%s281_s7 + $0x50] sm:$0xff]  ;;  %v1097_v12 = vld [vmem:[%s281_s7 + $0x18] sm:$0xff]  ;;  %v1101_v14 = vld [vmem:[%s281_s7 + $0x20] sm:$0xff] }
  0x24   : > { %841 = vmatpush.msra.mxu3 %v337_v23  ;;  %473 = vmatpush.msra.mxu1 %v337_v23  ;;  %v1099_v13 = vld [vmem:[%s281_s7 + $0x58] sm:$0xff]  ;;  %v1103_v15 = vld [vmem:[%s281_s7 + $0x60] sm:$0xff]  ;;  %v1105_v18 = vld [vmem:[%s281_s7 + $0x28] sm:$0xff] }
  0x25   : > { %826 = vmatpush.msra.mxu2 %v320_v24  ;;  %409 = vmatpush.msra.mxu0 %v320_v24  ;;  %v1107_v19 = vld [vmem:[%s281_s7 + $0x68] sm:$0xff]  ;;  %v1109_v20 = vld [vmem:[%s281_s7 + $0x30] sm:$0xff]  ;;  %v1118_v22 = vld [vmem:[%s281_s7 + $0x38] sm:$0xff] }
  0x26   : > { %842 = vmatpush.msra.mxu3 %v336_v25  ;;  %474 = vmatpush.msra.mxu1 %v336_v25  ;;  %v1116_v21 = vld [vmem:[%s281_s7 + $0x70] sm:$0xff]  ;;  %v1120_v23 = vld [vmem:[%s281_s7 + $0x78] sm:$0xff] }
  0x27   : > { %827 = vmatpush.msra.mxu2 %v319_v26  ;;  %410 = vmatpush.msra.mxu0 %v319_v26  ;;  %v638_v26 = vld [vmem:[%s281_s7 + $0x40] sm:$0xff] }
  0x28   : > { %843 = vmatpush.msra.mxu3 %v335_v27  ;;  %475 = vmatpush.msra.mxu1 %v335_v27 }
  0x29   : > { %828 = vmatpush.msra.mxu2 %v318_v28  ;;  %411 = vmatpush.msra.mxu0 %v318_v28 }
  0x2a   : > { %844 = vmatpush.msra.mxu3 %v334_v29  ;;  %476 = vmatpush.msra.mxu1 %v334_v29 }
  0x2b   : > { %829 = vmatpush.msra.mxu2 %v317_v30  ;;  %412 = vmatpush.msra.mxu0 %v317_v30 }
  0x2c   : > { %845 = vmatpush.msra.mxu3 %v333_v31  ;;  %437 = vmatmul.f32.vlgmr.msra.gmra.mxu2 %v381_v32 }
  0x2d   : > { %502 = vmatmul.f32.vlgmr.msra.gmra.mxu3 %v382_v33  ;;  %477 = vmatpush.msra.mxu1 %v333_v31 }
  0x2e   : > { %413 = vmatmul.f32.vlgmr.msra.gmra.mxu0 %v365_v34  ;;  %478 = vmatmul.f32.vlgmr.msra.gmra.mxu1 %v366_v35 }
  0x34   : > { %440 = vmatmul.f32.gmra.mxu2 %v383_v36 }
  0x35   : > { %505 = vmatmul.f32.gmra.mxu3 %v384_v37 }
  0x36   : > { %416 = vmatmul.f32.gmra.mxu0 %v367_v38  ;;  %481 = vmatmul.f32.gmra.mxu1 %v368_v39 }
  0x3c   : > { %443 = vmatmul.f32.gmra.mxu2 %v385_v40 }
  0x3d   : > { %508 = vmatmul.f32.gmra.mxu3 %v386_v41 }
  0x3e   : > { %419 = vmatmul.f32.gmra.mxu0 %v369_v42  ;;  %484 = vmatmul.f32.gmra.mxu1 %v370_v43 }
  0x44   : > { %446 = vmatmul.f32.gmra.mxu2 %v387_v44 }
  0x45   : > { %511 = vmatmul.f32.gmra.mxu3 %v388_v45 }
  0x46   : > { %422 = vmatmul.f32.gmra.mxu0 %v371_v46  ;;  %487 = vmatmul.f32.gmra.mxu1 %v372_v47 }
  0x4c   : > { %449 = vmatmul.f32.gmra.mxu2 %v389_v48 }
  0x4d   : > { %514 = vmatmul.f32.gmra.mxu3 %v390_v49 }
  0x4e   : > { %425 = vmatmul.f32.gmra.mxu0 %v373_v50  ;;  %490 = vmatmul.f32.gmra.mxu1 %v374_v51 }
  0x54   : > { %452 = vmatmul.f32.gmra.mxu2 %v391_v52 }
  0x55   : > { %517 = vmatmul.f32.gmra.mxu3 %v392_v53 }
  0x56   : > { %428 = vmatmul.f32.gmra.mxu0 %v375_v54  ;;  %493 = vmatmul.f32.gmra.mxu1 %v376_v55 }
  0x5c   : > { %455 = vmatmul.f32.gmra.mxu2 %v393_v56 }
  0x5d   : > { %520 = vmatmul.f32.gmra.mxu3 %v394_v57 }
  0x5e   : > { %431 = vmatmul.f32.gmra.mxu0 %v377_v58  ;;  %496 = vmatmul.f32.gmra.mxu1 %v378_v59 }
  0x64   : > { %458 = vmatmul.f32.gmra.mxu2 %v395_v60 }
  0x65   : > { %523 = vmatmul.f32.gmra.mxu3 %v396_v61 }
  0x66   : > { %434 = vmatmul.f32.gmra.mxu0 %v379_v62  ;;  %499 = vmatmul.f32.gmra.mxu1 %v380_v63 }
  0xab   : > { %v414_v1 = vpop.f32.mrf.mxu0  ;;  %v479_v2 = vpop.f32.mrf.mxu1 }
  0xac   : > { %v480_v3 = vadd.f32 %v479_v2, %v414_v1 }
  0xae   : > { %v582_v4 = vadd.f32 %v1086_v0, %v480_v3 }
  0xaf   : > { %v438_v6 = vpop.f32.mrf.mxu2 }
  0xb0   : > { %v503_v7 = vpop.f32.mrf.mxu3  ;;  %v598_v16 = vmax.f32 %v582_v4, 0.0 }
  0xb1   : > { %v504_v17 = vadd.f32 %v503_v7, %v438_v6 }
  0xb2   : > { %614 = vst [vmem:[%s1095_s8] sm:$0xff] %v598_v16  ;;  %v646_v24 = vmax.f32 %v630_v5, %v598_v16 }
  0xb3   : > { %v590_v25 = vadd.f32 %v1086_v0, %v504_v17  ;;  %v417_v27 = vpop.f32.mrf.mxu0  ;;  %v482_v28 = vpop.f32.mrf.mxu1 }
  0xb4   : > { %v483_v30 = vadd.f32 %v482_v28, %v417_v27  ;;  %662 = vst [vmem:[%s1114_s13] sm:$0xff] %v646_v24 }
  0xb5   : > { %v606_v29 = vmax.f32 %v590_v25, 0.0 }
  0xb6   : > { %v583_v32 = vadd.f32 %v1086_v0, %v483_v30 }
  0xb7   : > { %622 = vst [vmem:[%s1095_s8 + $0x40] sm:$0xff] %v606_v29  ;;  %v654_v31 = vmax.f32 %v638_v26, %v606_v29  ;;  %v441_v33 = vpop.f32.mrf.mxu2 }
  0xb8   : > { %v506_v34 = vpop.f32.mrf.mxu3  ;;  %v599_v35 = vmax.f32 %v583_v32, 0.0 }
  0xb9   : > { %v507_v36 = vadd.f32 %v506_v34, %v441_v33  ;;  %670 = vst [vmem:[%s1114_s13 + $0x40] sm:$0xff] %v654_v31 }
  0xba   : > { %615 = vst [vmem:[%s1095_s8 + $0x8] sm:$0xff] %v599_v35  ;;  %v647_v37 = vmax.f32 %v631_v8, %v599_v35 }
  0xbb   : > { %v591_v38 = vadd.f32 %v1086_v0, %v507_v36  ;;  %v420_v39 = vpop.f32.mrf.mxu0  ;;  %v485_v40 = vpop.f32.mrf.mxu1 }
  0xbc   : > { %v486_v42 = vadd.f32 %v485_v40, %v420_v39  ;;  %663 = vst [vmem:[%s1114_s13 + $0x8] sm:$0xff] %v647_v37 }
  0xbd   : > { %v607_v41 = vmax.f32 %v591_v38, 0.0 }
  0xbe   : > { %v584_v44 = vadd.f32 %v1086_v0, %v486_v42 }
  0xbf   : > { %623 = vst [vmem:[%s1095_s8 + $0x48] sm:$0xff] %v607_v41  ;;  %v655_v43 = vmax.f32 %v639_v9, %v607_v41  ;;  %v444_v45 = vpop.f32.mrf.mxu2 }
  0xc0   : > { %v509_v46 = vpop.f32.mrf.mxu3  ;;  %v600_v47 = vmax.f32 %v584_v44, 0.0 }
  0xc1   : > { %v510_v48 = vadd.f32 %v509_v46, %v444_v45  ;;  %671 = vst [vmem:[%s1114_s13 + $0x48] sm:$0xff] %v655_v43 }
  0xc2   : > { %616 = vst [vmem:[%s1095_s8 + $0x10] sm:$0xff] %v600_v47  ;;  %v648_v49 = vmax.f32 %v632_v10, %v600_v47 }
  0xc3   : > { %v592_v50 = vadd.f32 %v1086_v0, %v510_v48  ;;  %v423_v51 = vpop.f32.mrf.mxu0  ;;  %v488_v52 = vpop.f32.mrf.mxu1 }
  0xc4   : > { %v489_v54 = vadd.f32 %v488_v52, %v423_v51  ;;  %664 = vst [vmem:[%s1114_s13 + $0x10] sm:$0xff] %v648_v49 }
  0xc5   : > { %v608_v53 = vmax.f32 %v592_v50, 0.0 }
  0xc6   : > { %v585_v56 = vadd.f32 %v1086_v0, %v489_v54 }
  0xc7   : > { %624 = vst [vmem:[%s1095_s8 + $0x50] sm:$0xff] %v608_v53  ;;  %v656_v55 = vmax.f32 %v640_v11, %v608_v53  ;;  %v447_v57 = vpop.f32.mrf.mxu2 }
  0xc8   : > { %v512_v58 = vpop.f32.mrf.mxu3  ;;  %v601_v59 = vmax.f32 %v585_v56, 0.0 }
  0xc9   : > { %v513_v60 = vadd.f32 %v512_v58, %v447_v57  ;;  %672 = vst [vmem:[%s1114_s13 + $0x50] sm:$0xff] %v656_v55 }
  0xca   : > { %617 = vst [vmem:[%s1095_s8 + $0x18] sm:$0xff] %v601_v59  ;;  %v649_v61 = vmax.f32 %v1097_v12, %v601_v59 }
  0xcb   : > { %v593_v62 = vadd.f32 %v1086_v0, %v513_v60  ;;  %v426_v63 = vpop.f32.mrf.mxu0  ;;  %v491_v1 = vpop.f32.mrf.mxu1 }
  0xcc   : > { %v492_v3 = vadd.f32 %v491_v1, %v426_v63  ;;  %665 = vst [vmem:[%s1114_s13 + $0x18] sm:$0xff] %v649_v61 }
  0xcd   : > { %v609_v2 = vmax.f32 %v593_v62, 0.0 }
  0xce   : > { %v586_v5 = vadd.f32 %v1086_v0, %v492_v3 }
  0xcf   : > { %625 = vst [vmem:[%s1095_s8 + $0x58] sm:$0xff] %v609_v2  ;;  %v657_v4 = vmax.f32 %v1099_v13, %v609_v2  ;;  %v450_v6 = vpop.f32.mrf.mxu2 }
  0xd0   : > { %v515_v7 = vpop.f32.mrf.mxu3  ;;  %v602_v8 = vmax.f32 %v586_v5, 0.0 }
  0xd1   : > { %v516_v9 = vadd.f32 %v515_v7, %v450_v6  ;;  %673 = vst [vmem:[%s1114_s13 + $0x58] sm:$0xff] %v657_v4 }
  0xd2   : > { %618 = vst [vmem:[%s1095_s8 + $0x20] sm:$0xff] %v602_v8  ;;  %v650_v10 = vmax.f32 %v1101_v14, %v602_v8 }
  0xd3   : > { %v594_v11 = vadd.f32 %v1086_v0, %v516_v9  ;;  %v429_v12 = vpop.f32.mrf.mxu0  ;;  %v494_v16 = vpop.f32.mrf.mxu1 }
  0xd4   : > { %v495_v24 = vadd.f32 %v494_v16, %v429_v12  ;;  %666 = vst [vmem:[%s1114_s13 + $0x20] sm:$0xff] %v650_v10 }
  0xd5   : > { %v610_v17 = vmax.f32 %v594_v11, 0.0 }
  0xd6   : > { %v587_v25 = vadd.f32 %v1086_v0, %v495_v24 }
  0xd7   : > { %626 = vst [vmem:[%s1095_s8 + $0x60] sm:$0xff] %v610_v17  ;;  %v658_v13 = vmax.f32 %v1103_v15, %v610_v17  ;;  %v453_v26 = vpop.f32.mrf.mxu2 }
  0xd8   : > { %v518_v27 = vpop.f32.mrf.mxu3  ;;  %v603_v28 = vmax.f32 %v587_v25, 0.0 }
  0xd9   : > { %v519_v29 = vadd.f32 %v518_v27, %v453_v26  ;;  %674 = vst [vmem:[%s1114_s13 + $0x60] sm:$0xff] %v658_v13 }
  0xda   : > { %619 = vst [vmem:[%s1095_s8 + $0x28] sm:$0xff] %v603_v28  ;;  %v651_v14 = vmax.f32 %v1105_v18, %v603_v28 }
  0xdb   : > { %v595_v30 = vadd.f32 %v1086_v0, %v519_v29  ;;  %v432_v31 = vpop.f32.mrf.mxu0  ;;  %v497_v32 = vpop.f32.mrf.mxu1 }
  0xdc   : > { %v498_v34 = vadd.f32 %v497_v32, %v432_v31  ;;  %667 = vst [vmem:[%s1114_s13 + $0x28] sm:$0xff] %v651_v14 }
  0xdd   : > { %v611_v33 = vmax.f32 %v595_v30, 0.0 }
  0xde   : > { %v588_v35 = vadd.f32 %v1086_v0, %v498_v34 }
  0xdf   : > { %627 = vst [vmem:[%s1095_s8 + $0x68] sm:$0xff] %v611_v33  ;;  %v659_v15 = vmax.f32 %v1107_v19, %v611_v33  ;;  %v456_v36 = vpop.f32.mrf.mxu2 }
  0xe0   : > { %v521_v37 = vpop.f32.mrf.mxu3  ;;  %v604_v38 = vmax.f32 %v588_v35, 0.0 }
  0xe1   : > { %v522_v39 = vadd.f32 %v521_v37, %v456_v36  ;;  %675 = vst [vmem:[%s1114_s13 + $0x68] sm:$0xff] %v659_v15 }
  0xe2   : > { %620 = vst [vmem:[%s1095_s8 + $0x30] sm:$0xff] %v604_v38  ;;  %v652_v18 = vmax.f32 %v1109_v20, %v604_v38 }
  0xe3   : > { %v596_v40 = vadd.f32 %v1086_v0, %v522_v39  ;;  %v435_v41 = vpop.f32.mrf.mxu0  ;;  %v500_v42 = vpop.f32.mrf.mxu1 }
  0xe4   : > { %v501_v19 = vadd.f32 %v500_v42, %v435_v41  ;;  %668 = vst [vmem:[%s1114_s13 + $0x30] sm:$0xff] %v652_v18 }
  0xe5   : > { %v612_v43 = vmax.f32 %v596_v40, 0.0 }
  0xe6   : > { %v589_v45 = vadd.f32 %v1086_v0, %v501_v19 }
  0xe7   : > { %628 = vst [vmem:[%s1095_s8 + $0x70] sm:$0xff] %v612_v43  ;;  %v660_v44 = vmax.f32 %v1116_v21, %v612_v43  ;;  %v459_v46 = vpop.f32.mrf.mxu2 }
  0xe8   : > { %v524_v47 = vpop.f32.mrf.mxu3  ;;  %v605_v48 = vmax.f32 %v589_v45, 0.0 }
  0xe9   : > { %v525_v49 = vadd.f32 %v524_v47, %v459_v46  ;;  %676 = vst [vmem:[%s1114_s13 + $0x70] sm:$0xff] %v660_v44 }
  0xea   : > { %621 = vst [vmem:[%s1095_s8 + $0x38] sm:$0xff] %v605_v48  ;;  %v653_v20 = vmax.f32 %v1118_v22, %v605_v48 }
  0xeb   : > { %v597_v50 = vadd.f32 %v1086_v0, %v525_v49 }
  0xec   : > { %669 = vst [vmem:[%s1114_s13 + $0x38] sm:$0xff] %v653_v20 }
  0xed   : > { %v613_v51 = vmax.f32 %v597_v50, 0.0 }
  0xef   : > { %629 = vst [vmem:[%s1095_s8 + $0x78] sm:$0xff] %v613_v51  ;;  %v661_v52 = vmax.f32 %v1120_v23, %v613_v51 }
  0xf1   : > { %677 = vst [vmem:[%s1114_s13 + $0x78] sm:$0xff] %v661_v52 }
  0xf2 PF: > { %s16_s20 = sadd.s32 1, %s893_s20   ;;  %s1194_s18 = smov %s889_s19 }
  0xf3   : > { %p13_p5 = scmp.ge.s32.totalorder %s16_s20, 4   ;;  %s1195_s19 = smov %s1197_s21 }
  0xf5   :  { %15 = sbr.rel (!%p13_p5) target bundleno = 2 (0x2), region = 90 }

</bundles_post_ra>
